<compile_context>
chip_gen: v7x
topology: tpu7x:2x2x1
jax: 0.10.0
libtpu: 0.0.40
codegen_flags: <defaults>
</compile_context>

<pallas_src>
import jax
import jax.numpy as jnp
from jax.experimental import pallas as pl
from jax.experimental.pallas import tpu as pltpu

EPS = 1e-5          # torch.nn.BatchNorm1d default eps
NEG_SLOPE = 0.01    # torch.nn.LeakyReLU default negative_slope


def _leaky_relu(v):
    return jnp.where(v > 0, v, NEG_SLOPE * v)


def _round_up(a, b):
    return ((a + b - 1) // b) * b


# ---------------------------------------------------------------------------
# Kernel: one batch tile per grid step.
#   fb2_ref : (1,)   f32, SMEM scalar       (folded fc2 bias)
#   x_ref   : (TB,F) f32 or bf16            (batch tile)
#   w1_ref  : (F,H)  bf16                   (BN1-folded fc weight, resident)
#   fb1_ref : (1,H)  f32                    (BN1-folded fc bias, resident)
#   w2_ref  : (1,H)  f32                    (BN2-folded fc2 weight row, resident)
#   o_ref   : (TB,1) f32
# ---------------------------------------------------------------------------
def linear_net_kernel(fb2_ref, x_ref, w1_ref, fb1_ref, w2_ref, o_ref):
    # bn1 + dropout1 already folded / identity -> straight to the MXU.
    x = x_ref[...]
    if x.dtype != jnp.bfloat16:            # trace-time branch: skip if caller
        x = x.astype(jnp.bfloat16)         # already supplies bf16 activations
    z = jnp.dot(x, w1_ref[...],
                preferred_element_type=jnp.float32) + fb1_ref[...]
    h = _leaky_relu(z)                     # f32 VPU
    # dropout2 identity; bn2 folded into w2/fb2.
    # fc2: elementwise mul + lane reduce (XLU), output width 1.
    out = jnp.sum(h * w2_ref[...], axis=-1, keepdims=True) + fb2_ref[0]
    o_ref[...] = _leaky_relu(out)


def _choose_tile(B, block_b, x_dtype):
    """Pick (tile_rows, padded_batch)."""
    sub = 16 if x_dtype == jnp.bfloat16 else 8
    if B < 512:
        # Latency path: single grid step, pad only to the sublane multiple.
        tb = _round_up(B, sub)
        return tb, tb
    # Throughput path: 256-row-aligned tiles (MXU-height multiple on v6e/v7x,
    # multiple of v5e's 128), capped so the grid has >=2 steps (v7x megacore),
    # and capped by block_b.
    tb = min(block_b, _round_up(pl.cdiv(B, 2), 256))
    tb = max(tb, 256)
    b_pad = _round_up(B, tb)
    return tb, b_pad


def linear_net_forward(x, folded, *, block_b=8192):
    """x: (B, F) float32 (or bfloat16), folded: output of fold_params.
    Returns (B, 1) float32."""
    B, F = x.shape
    H = folded["w1"].shape[1]

    tb, b_pad = _choose_tile(B, block_b, x.dtype)
    if b_pad != B:
        x = jnp.pad(x, ((0, b_pad - B), (0, 0)))

    grid = (b_pad // tb,)

    out = pl.pallas_call(
        linear_net_kernel,
        out_shape=jax.ShapeDtypeStruct((b_pad, 1), jnp.float32),
        grid=grid,
        in_specs=[
            pl.BlockSpec(memory_space=pltpu.MemorySpace.SMEM),   # fb2 scalar
            pl.BlockSpec((tb, F), lambda i: (i, 0)),             # x batch tile
            pl.BlockSpec((F, H), lambda i: (0, 0)),              # w1 (resident)
            pl.BlockSpec((1, H), lambda i: (0, 0)),              # fb1 (resident)
            pl.BlockSpec((1, H), lambda i: (0, 0)),              # w2 (resident)
        ],
        out_specs=pl.BlockSpec((tb, 1), lambda i: (i, 0)),
        compiler_params=pltpu.CompilerParams(
            dimension_semantics=("parallel",)),   # v7x: shard batch over 2 TCs
    )(folded["fb2"], x, folded["w1"], folded["fb1"], folded["w2"])

    return out[:B]


# ---------------------------------------------------------------------------
# One-time parameter prep: fold eval-mode BatchNorms into the linear layers.
# (Only valid with frozen running stats; re-run after any BN-stat update.)
# ---------------------------------------------------------------------------
def fold_params(p):
    s1 = p["g1"] * jax.lax.rsqrt(p["v1"] + EPS)           # (1, F)
    t1 = p["b1"] - p["m1"] * s1                           # (1, F)
    w1f = s1.reshape(-1, 1) * p["w1"]                     # (F, H)
    fb1f = t1 @ p["w1"] + p["fb1"]                        # (1, H)

    s2 = p["g2"] * jax.lax.rsqrt(p["v2"] + EPS)           # (1, H)
    t2 = p["b2"] - p["m2"] * s2                           # (1, H)
    w2f = s2 * p["w2_row"]                                # (1, H)
    fb2f = jnp.sum(t2 * p["w2_row"]) + p["fb2"][0, 0]     # scalar

    return dict(
        w1=w1f.astype(jnp.bfloat16),      # bf16 MXU operand, half the DMA bytes
        fb1=fb1f.astype(jnp.float32),
        w2=w2f.astype(jnp.float32),
        fb2=fb2f.reshape(1).astype(jnp.float32),
    )


def init_params(key, in_features, hidden_size):
    """Deterministic parameter init mirroring PyTorch module shapes.
    w1 is stored as (F, H) == torch fc.weight.T; w2_row as (1, H) == fc2.weight."""
    k1, k2, k3, k4 = jax.random.split(key, 4)

    # BatchNorm1d defaults: weight=1, bias=0, running_mean=0, running_var=1
    g1 = jnp.ones((1, in_features), jnp.float32)
    b1 = jnp.zeros((1, in_features), jnp.float32)
    m1 = jnp.zeros((1, in_features), jnp.float32)
    v1 = jnp.ones((1, in_features), jnp.float32)

    bound1 = 1.0 / jnp.sqrt(in_features)
    w1 = jax.random.uniform(k1, (in_features, hidden_size), jnp.float32,
                            -bound1, bound1)
    fb1 = jax.random.uniform(k2, (1, hidden_size), jnp.float32, -bound1, bound1)

    g2 = jnp.ones((1, hidden_size), jnp.float32)
    b2 = jnp.zeros((1, hidden_size), jnp.float32)
    m2 = jnp.zeros((1, hidden_size), jnp.float32)
    v2 = jnp.ones((1, hidden_size), jnp.float32)

    bound2 = 1.0 / jnp.sqrt(hidden_size)
    w2_row = jax.random.uniform(k3, (1, hidden_size), jnp.float32,
                                -bound2, bound2)
    fb2 = jax.random.uniform(k4, (1, 1), jnp.float32, -bound2, bound2)

    return dict(g1=g1, b1=b1, m1=m1, v1=v1, w1=w1, fb1=fb1,
                g2=g2, b2=b2, m2=m2, v2=v2, w2_row=w2_row, fb2=fb2)


def reference_forward(x, p):
    """Pure-f32 JAX reference of the PyTorch eval forward (unfolded params)."""
    y = (x - p["m1"]) * jax.lax.rsqrt(p["v1"] + EPS) * p["g1"] + p["b1"]
    h = y @ p["w1"] + p["fb1"]
    h = jnp.where(h > 0, h, NEG_SLOPE * h)
    h = (h - p["m2"]) * jax.lax.rsqrt(p["v2"] + EPS) * p["g2"] + p["b2"]
    out = h @ p["w2_row"].T + p["fb2"]
    return jnp.where(out > 0, out, NEG_SLOPE * out)


def _rel_err(a, b):
    return float(jnp.max(jnp.abs(a - b)) / (jnp.max(jnp.abs(b)) + 1e-6))


if __name__ == "__main__":
    F, H = 32, 128   # small shapes: in_features=32, hidden=128
    key = jax.random.PRNGKey(0)
    kx, kp, kx2 = jax.random.split(key, 3)

    raw = init_params(kp, F, H)
    folded = fold_params(raw)          # one-time prep (amortized across calls)

    # --- small-batch / latency path (single grid step, 8-row pad) ---
    B = 8
    x = jax.random.normal(kx, (B, F), jnp.float32)
    out = jax.block_until_ready(linear_net_forward(x, folded))
    ref = reference_forward(x, raw)
    assert out.shape == (B, 1)
    # bf16 MXU operands -> relative-only tolerance vs the f32 reference.
    assert _rel_err(out, ref) < 2e-2, "mismatch vs JAX reference (small batch)"

    # --- throughput path (256-aligned tiles, >=2 grid steps for v7x) ---
    B2 = 1024
    x2 = jax.random.normal(kx2, (B2, F), jnp.float32)
    out2 = jax.block_until_ready(linear_net_forward(x2, folded))
    ref2 = reference_forward(x2, raw)
    assert out2.shape == (B2, 1)
    assert _rel_err(out2, ref2) < 2e-2, "mismatch vs JAX reference (tiled batch)"

    print("KERNEL_OK")
</pallas_src>

<mosaic_0001>
module attributes {stable_mosaic.version = 11 : i64} {
  func.func @linear_net_kernel(%arg0: i32, %arg1: memref<1xf32, #tpu.memory_space<smem>>, %arg2: memref<8x32xf32, #tpu.memory_space<vmem>>, %arg3: memref<32x128xbf16, #tpu.memory_space<vmem>>, %arg4: memref<1x128xf32, #tpu.memory_space<vmem>>, %arg5: memref<1x128xf32, #tpu.memory_space<vmem>>, %arg6: memref<8x1xf32, #tpu.memory_space<vmem>>) attributes {dimension_semantics = [#tpu.dimension_semantics<parallel>], iteration_bounds = array<i64: 1>, scalar_prefetch = 0 : i64, scratch_operands = 0 : i64, tpu.core_type = #tpu.core_type<tc>, window_params = [{transform_indices = @transform_0, window_bounds = array<i64: 1>}, {transform_indices = @transform_1, window_bounds = array<i64: 8, 32>}, {pipeline_mode = #tpu.pipeline_mode<synchronous>, transform_indices = @transform_2, window_bounds = array<i64: 32, 128>}, {pipeline_mode = #tpu.pipeline_mode<synchronous>, transform_indices = @transform_3, window_bounds = array<i64: 1, 128>}, {pipeline_mode = #tpu.pipeline_mode<synchronous>, transform_indices = @transform_4, window_bounds = array<i64: 1, 128>}, {transform_indices = @transform_5, window_bounds = array<i64: 8, 1>}]} {
    %c0 = arith.constant 0 : index
    %c0_0 = arith.constant 0 : index
    %0 = vector.load %arg2[%c0, %c0_0] : memref<8x32xf32, #tpu.memory_space<vmem>>, vector<8x32xf32>
    %1 = arith.truncf %0 : vector<8x32xf32> to vector<8x32xbf16>
    %c0_1 = arith.constant 0 : index
    %c0_2 = arith.constant 0 : index
    %2 = vector.load %arg3[%c0_1, %c0_2] : memref<32x128xbf16, #tpu.memory_space<vmem>>, vector<32x128xbf16>
    %cst = arith.constant dense<0.000000e+00> : vector<8x128xf32>
    %3 = tpu.matmul %1, %2, %cst {dimension_numbers = #tpu.dot_dimension_numbers<[1], [0], [0], [1], [0, 0, 1, 1], [], []>} : vector<8x32xbf16>, vector<32x128xbf16>, vector<8x128xf32> -> vector<8x128xf32>
    %c0_3 = arith.constant 0 : index
    %c0_4 = arith.constant 0 : index
    %4 = vector.load %arg4[%c0_3, %c0_4] : memref<1x128xf32, #tpu.memory_space<vmem>>, vector<1x128xf32>
    %5 = vector.broadcast %4 : vector<1x128xf32> to vector<8x128xf32>
    %6 = arith.addf %3, %5 : vector<8x128xf32>
    %cst_5 = arith.constant 0.000000e+00 : f32
    %7 = vector.broadcast %cst_5 : f32 to vector<8x128xf32>
    %8 = arith.cmpf ogt, %6, %7 : vector<8x128xf32>
    %cst_6 = arith.constant 0.00999999977 : f32
    %9 = vector.broadcast %cst_6 : f32 to vector<8x128xf32>
    %10 = arith.mulf %9, %6 : vector<8x128xf32>
    %11 = arith.select %8, %6, %10 : vector<8x128xi1>, vector<8x128xf32>
    %c0_7 = arith.constant 0 : index
    %c0_8 = arith.constant 0 : index
    %12 = vector.load %arg5[%c0_7, %c0_8] : memref<1x128xf32, #tpu.memory_space<vmem>>, vector<1x128xf32>
    %13 = vector.broadcast %12 : vector<1x128xf32> to vector<8x128xf32>
    %14 = arith.mulf %11, %13 : vector<8x128xf32>
    %cst_9 = arith.constant dense<0.000000e+00> : vector<8xf32>
    %15 = vector.multi_reduction <add>, %14, %cst_9 [1] : vector<8x128xf32> to vector<8xf32>
    %16 = vector.shape_cast %15 : vector<8xf32> to vector<8x1xf32>
    %c0_10 = arith.constant 0 : index
    %17 = memref.load %arg1[%c0_10] : memref<1xf32, #tpu.memory_space<smem>>
    %18 = vector.broadcast %17 : f32 to vector<8x1xf32>
    %19 = arith.addf %16, %18 : vector<8x1xf32>
    %cst_11 = arith.constant 0.000000e+00 : f32
    %20 = vector.broadcast %cst_11 : f32 to vector<8x1xf32>
    %21 = arith.cmpf ogt, %19, %20 : vector<8x1xf32>
    %cst_12 = arith.constant 0.00999999977 : f32
    %22 = vector.broadcast %cst_12 : f32 to vector<8x1xf32>
    %23 = arith.mulf %22, %19 : vector<8x1xf32>
    %24 = arith.select %21, %19, %23 : vector<8x1xi1>, vector<8x1xf32>
    %c0_13 = arith.constant 0 : index
    %c0_14 = arith.constant 0 : index
    %25 = vector.load %arg6[%c0_13, %c0_14] : memref<8x1xf32, #tpu.memory_space<vmem>>, vector<8x1xf32>
    tpu.vector_store %arg6[%c0_13, %c0_14], %24 {strides = array<i32>} : memref<8x1xf32, #tpu.memory_space<vmem>>, vector<8x1xf32>,
    return
  }
  func.func @transform_0(%arg0: i32) -> i32 {
    %c0_i32 = arith.constant 0 : i32
    %c0_i32_0 = arith.constant 0 : i32
    return %c0_i32 : i32
  }
  func.func @transform_1(%arg0: i32) -> (i32, i32) {
    %c0_i32 = arith.constant 0 : i32
    %c0_i32_0 = arith.constant 0 : i32
    return %arg0, %c0_i32 : i32, i32
  }
  func.func @transform_2(%arg0: i32) -> (i32, i32) {
    %c0_i32 = arith.constant 0 : i32
    %c0_i32_0 = arith.constant 0 : i32
    %c0_i32_1 = arith.constant 0 : i32
    return %c0_i32, %c0_i32_0 : i32, i32
  }
  func.func @transform_3(%arg0: i32) -> (i32, i32) {
    %c0_i32 = arith.constant 0 : i32
    %c0_i32_0 = arith.constant 0 : i32
    %c0_i32_1 = arith.constant 0 : i32
    return %c0_i32, %c0_i32_0 : i32, i32
  }
  func.func @transform_4(%arg0: i32) -> (i32, i32) {
    %c0_i32 = arith.constant 0 : i32
    %c0_i32_0 = arith.constant 0 : i32
    %c0_i32_1 = arith.constant 0 : i32
    return %c0_i32, %c0_i32_0 : i32, i32
  }
  func.func @transform_5(%arg0: i32) -> (i32, i32) {
    %c0_i32 = arith.constant 0 : i32
    %c0_i32_0 = arith.constant 0 : i32
    return %arg0, %c0_i32 : i32, i32
  }
}

</mosaic_0001>

<bundles_post_ra>
// kernel: tpu_custom_call.1
= control target key start
LH: loop header
LB: loop body
LE: loop exit
PB: predicated region body
PF: predicated region fallthrough
CT: control target
= control target key end

     0   :  { %11 = vsyncpa [#allocation4], 0  ;;  %s295_s0 = inlined_call_operand.<no memory space> [shape: f32[1], index: 0, kind: input, shape index: {}]   ;;  %s296_s1 = inlined_call_operand.hbm [shape: f32[8,32], index: 1, kind: input, shape index: {}]   ;;  %s297_s2 = inlined_call_operand.hbm [shape: bf16[32,128], index: 2, kind: input, shape index: {}]   ;;  %s298_s3 = inlined_call_operand.vmem [shape: f32[1,128], index: 3, kind: input, shape index: {}]   ;;  %s299_s4 = inlined_call_operand.vmem [shape: f32[1,128], index: 4, kind: input, shape index: {}]   ;;  %s300_s5 = inlined_call_operand.vmem [shape: f32[8,1], index: 5, kind: output, shape index: {}]  }
   0x1   :  { %12 = vsyncpa [#allocation6], 0  ;;  %s216_s18 = smov [#allocation3]   ;;  %s217_s20 = smov [#allocation5]  }
   0x2   :  { %s21_s19 = sshll.u32 %s216_s18, 4  ;;  %s30_s21 = sshll.u32 %s217_s20, 4  ;;  %s22_s19 = int_to_ptr.vmem [resolvable:$true] %s21_s19  ;;  %s252_s21 = int_to_ptr.vmem [resolvable:$true] %s30_s21 }
   0x3   :  { %s168_s24 = scalar_lea.hbm %s296_s1, 128 }
   0x4   :  { %p169_p0 = scmp.ne.s32.totalorder %s296_s1, %s168_s24  ;;  %p172_p1 = scmp.lt.u32.totalorder %s168_s24, %s296_s1 }
   0x6   :  { %p174_p2 = pnand %p172_p1, %p169_p0 }
   0x8   :  { %177 = shalt.err (!%p174_p2)
}
   0x9   :  { %s178_s29 = scalar_lea.vmem %s22_s19, 128  ;;  %p183_p4 = scmp.lt.s32.totalorder %s22_s19, %s22_s19 }
   0xa   :  { %p179_p3 = scmp.ne.s32.totalorder %s22_s19, %s178_s29  ;;  %p184_p5 = scmp.lt.s32.totalorder %s178_s29, %s178_s29 }
   0xc   :  { %p185_p6 = por %p184_p5, %p183_p4 }
   0xe   :  { %p186_p7 = pnand %p185_p6, %p179_p3 }
  0x10   :  { %189 = shalt.err (!%p186_p7)
}
  0x11   :  { %24 = dma.hbm_to_vmem [thread:$0]  %s296_s1, 128, %s22_s19, [#allocation4]  }
  0x12   :  { %s190_s9 = scalar_lea.hbm %s297_s2, 256 }
  0x13   :  { %p191_p8 = scmp.ne.s32.totalorder %s297_s2, %s190_s9  ;;  %p194_p9 = scmp.lt.u32.totalorder %s190_s9, %s297_s2 }
  0x15   :  { %p196_p10 = pnand %p194_p9, %p191_p8 }
  0x17   :  { %199 = shalt.err (!%p196_p10)
}
  0x18   :  { %s200_s14 = scalar_lea.vmem %s252_s21, 256  ;;  %p205_p12 = scmp.lt.s32.totalorder %s252_s21, %s252_s21 }
  0x19   :  { %p201_p11 = scmp.ne.s32.totalorder %s252_s21, %s200_s14  ;;  %p206_p13 = scmp.lt.s32.totalorder %s200_s14, %s200_s14 }
  0x1b   :  { %p207_p0 = por %p206_p13, %p205_p12 }
  0x1d   :  { %p208_p1 = pnand %p207_p0, %p201_p11 }
  0x1f   :  { %211 = shalt.err (!%p208_p1)
}
  0x20   :  { %s218_s1 = smov 64   ;;  %s219_s15 = smov 4  }
  0x21   :  { %36 = dma.hbm_to_vmem [thread:$0]  %s297_s2, 256, %s252_s21, [#allocation6], %s218_s1, %s218_s1, %s219_s15  }
  0x22   :  { %212 = dma.done.wait [#allocation4], 128  }
  0x23   :  { %213 = vsyncadd [#allocation4], 4294967168 }
  0x24   :  { %214 = dma.done.wait [#allocation6], 256  }
  0x25   :  { %215 = vsyncadd [#allocation6], 4294967040  ;;  %v220_v0 = vmov 0.0   ;;  %vm221_vm0 = vmmov 0   ;;  %v166_v1 = vld [vmem:[#allocation5] sm:$0xff]   ;;  %v167_v2 = vld [vmem:[#allocation5 + $0x8] sm:$0xff]   ;;  %v131_v15 = vstv %s295_s0 }
  0x26   :  { %152 = vmatprep.subr.bf16.mxu0 %v220_v0  ;;  %156 = vmatprep.mubr.msk.bf16.mxu0 %vm221_vm0, %v220_v0  ;;  %v48_v3 = vld [vmem:[#allocation3] sm:$0xff]  ;;  %vm73_vm1 = vcmask 261120   ;;  %vm136_vm4 = vcmask 7168  }
  0x27   :  { %153 = vmatpush3.bf16.msra.mxu0 %v166_v1  ;;  %v49_v4 = vpack.c.bf16 %v48_v3, %v48_v3  ;;  %v144_v5 = vld [vmem:[%s298_s3] ss:$0 sm:$0xff] }
  0x28   :  { %154 = vmatprep.subr.bf16.mxu0 %v220_v0  ;;  %v148_v12 = vld [vmem:[%s299_s4] ss:$0 sm:$0xff] }
  0x2b   :  { %155 = vmatpush3.bf16.msra.mxu0 %v167_v2 }
  0x2e   :  { %157 = vmatmul.mubr.msk.bf16.vlgmr.msra.gmra.mrb[0].mxu0 %vm73_vm1, %v49_v4 }
 0x101   :  { %v111_v6 = vpop.f32.mrb[0].mxu0 }
 0x102   :  { %v112_v7 = vadd.f32 %v144_v5, %v111_v6  ;;  %v158_v8 = vpop.f32.mrb[1].mxu0 }
 0x103   :  { %v114_v9 = vpop.f32.mrb[2].mxu0 }
 0x104   :  { %v118_v10 = vmul.f32 0.01, %v112_v7  ;;  %v159_v11 = vpop.f32.mrb[3].mxu0  ;;  %vm117_vm2 = vcmp.gt.f32.partialorder %v112_v7, 0.0 }
 0x106   :  { %v119_v13 = vsel %vm117_vm2, %v112_v7, %v118_v10 }
 0x107   :  { %v127_v14 = vmul.f32 %v148_v12, %v119_v13 }
 0x109   :  { %128 = vadd.xlane.f32.xlu0 %v127_v14 }
 0x196   :  { %v129_v16 = vpop.xlane.xlu0 %128 }
 0x197   :  { %v132_v17 = vadd.f32 %v131_v15, %v129_v16 }
 0x199   :  { %vm133_vm3 = vcmp.gt.f32.partialorder %v132_v17, 0.0  ;;  %v134_v18 = vmul.f32 0.01, %v132_v17 }
 0x19b   :  { %v135_v19 = vsel %vm133_vm3, %v132_v17, %v134_v18 }
 0x19c   :  { %137 = vst.msk [vmem:[%s300_s5] sm:$0xff] %vm136_vm4, %v135_v19 }
 0x19d   :  { %142 = vsyncpa [#allocation4], 1 }
 0x19e   :  { %143 = vsyncpa [#allocation6], 1 }

</bundles_post_ra>
